<compile_context>
chip_gen: v5e
topology: v5e:2x2
jax: 0.10.0
libtpu: 0.0.40
codegen_flags: <defaults>
</compile_context>

<pallas_src>
import jax
import jax.numpy as jnp
from jax.experimental import pallas as pl
from jax.experimental.pallas import tpu as pltpu


def _round_up(x, m):
    return (x + m - 1) // m * m


def _cdiv(a, b):
    return (a + b - 1) // b


def _actor_critic_kernel(x_ref, w1_ref, b1_ref, w2_ref, b2_ref, out_ref):
    # x: [TB, D]; w1: [D, HF] (f32 or bf16); b1: [1, HF] f32
    # w2: [HF, P] block-diagonal (critic -> col 0, actor -> cols 1..O); b2: [1, P] f32
    # Padded logit lanes carry a -1e30 bias (baked in fuse_params).
    w1 = w1_ref[...]
    w2 = w2_ref[...]
    x = x_ref[...].astype(w1.dtype)

    # Fused first layer (critic || actor || zero-pad). Bias + ReLU in f32.
    h = jnp.dot(x, w1, preferred_element_type=jnp.float32) + b1_ref[...]
    h = jnp.maximum(h, 0.0)                                        # [TB, HF]

    # Fused second layer: one [TB,HF] @ [HF,P] matmul (full-lane K).
    out = jnp.dot(h.astype(w2.dtype), w2,
                  preferred_element_type=jnp.float32) + b2_ref[...]  # [TB, P]

    # Numerically-stable softmax over the logit lanes. Only the value column
    # needs masking; padded lanes sit at ~-1e30 so exp underflows to exactly 0.
    tb, p = out.shape
    lane = jax.lax.broadcasted_iota(jnp.int32, (tb, p), dimension=1)
    is_value = lane == 0
    logits = jnp.where(is_value, -jnp.inf, out)
    m = jnp.max(logits, axis=-1, keepdims=True)
    e = jnp.exp(logits - m)                    # exp(-inf)=0 at value lane, ~0 at padded lanes
    denom = jnp.sum(e, axis=-1, keepdims=True)
    # exact reciprocal keeps row sums == 1 to f32 precision
    probs = e * pl.reciprocal(denom, approx=False)

    # Lane-dense store: col 0 = critic value, cols 1..O = probs, padded cols = 0.
    out_ref[...] = jnp.where(is_value, out, probs).astype(out_ref.dtype)


def actor_critic_forward(x, fused_params, num_outputs, *, block_b=512,
                         out_dtype=jnp.float32):
    """Fused actor-critic forward. Returns (probs [B,O], value [B,1]).

    block_b can be raised toward 1024 where VMEM allows (budget formula below);
    out_dtype=bf16 halves the output-slab writeback at the cost of ~1e-2 probs
    precision (keep f32 when 1e-5 tolerance is required).
    """
    w1, b1, w2, b2 = fused_params
    batch, d = x.shape
    hf = w1.shape[1]
    p = w2.shape[1]

    # bf16 fast path: cast x once at the producer so the x DMA is half-width.
    if w1.dtype != x.dtype:
        x = x.astype(w1.dtype)

    # Batch tiling. For batches larger than one tile, round the step count up
    # to an EVEN number so the "parallel" batch axis splits evenly across
    # v7x's two TensorCores (no-op on v5e/v6e: 1 TC).
    if batch > block_b:
        steps = _cdiv(batch, block_b)
        steps = steps + (steps % 2)
        tb = _round_up(_cdiv(batch, steps), 8)
    else:
        tb = _round_up(batch, 8)
    b_pad = _round_up(batch, tb)
    if b_pad != batch:
        x = jnp.pad(x, ((0, b_pad - batch), (0, 0)))
    grid = (b_pad // tb,)

    x_bytes = x.size * x.dtype.itemsize
    w_bytes = sum(int(a.size) * a.dtype.itemsize for a in (w1, b1, w2, b2))
    out_bytes = b_pad * p * jnp.dtype(out_dtype).itemsize
    cost = pl.CostEstimate(
        flops=2 * b_pad * hf * (d + p),
        transcendentals=b_pad * p,
        bytes_accessed=x_bytes + w_bytes + out_bytes,
    )

    # VMEM budget (sized against v7x's 64 MiB physical VMEM): double-buffered
    # x/out tiles + weights (counted x2 in case the compiler double-buffers the
    # constant-index blocks) + the [tb, hf] f32 intermediate, plus headroom.
    vmem_needed = (
        2 * tb * d * x.dtype.itemsize
        + 2 * tb * p * jnp.dtype(out_dtype).itemsize
        + 2 * w_bytes
        + 4 * tb * hf
        + (2 << 20)
    )
    vmem_limit = int(min(max(vmem_needed, 32 << 20), 64 << 20))

    combined = pl.pallas_call(
        _actor_critic_kernel,
        out_shape=jax.ShapeDtypeStruct((b_pad, p), out_dtype),
        grid=grid,
        in_specs=[
            pl.BlockSpec((tb, d), lambda i: (i, 0)),     # x tile per grid step
            # Weights/biases: constant index maps -> same block every step, so
            # they stay VMEM-resident (no re-DMA) across the grid.
            # TODO(synk): mark these pipeline_mode=pl.Buffered(1) once single-
            # buffered constant blocks are universally supported; at large D*H
            # that halves their VMEM footprint (already budgeted x2 above).
            pl.BlockSpec((d, hf), lambda i: (0, 0)),
            pl.BlockSpec((1, hf), lambda i: (0, 0)),
            pl.BlockSpec((hf, p), lambda i: (0, 0)),
            pl.BlockSpec((1, p), lambda i: (0, 0)),
        ],
        out_specs=pl.BlockSpec((tb, p), lambda i: (i, 0)),
        compiler_params=pltpu.CompilerParams(
            dimension_semantics=("parallel",),           # megacore sharding on v7x
            vmem_limit_bytes=vmem_limit,
        ),
        cost_estimate=cost,
    )(x, w1, b1, w2, b2)

    value = combined[:batch, 0:1]
    probs = combined[:batch, 1:1 + num_outputs]
    return probs, value


def init_params(key, num_inputs, num_outputs, hidden_size):
    """torch.nn.Linear-style init (uniform +-1/sqrt(fan_in)); W stored [in, out]."""
    ks = jax.random.split(key, 8)

    def lin(kw, kb, fan_in, fan_out):
        bound = 1.0 / jnp.sqrt(fan_in)
        w = jax.random.uniform(kw, (fan_in, fan_out), jnp.float32, -bound, bound)
        b = jax.random.uniform(kb, (1, fan_out), jnp.float32, -bound, bound)
        return w, b

    w1c, b1c = lin(ks[0], ks[1], num_inputs, hidden_size)
    w2c, b2c = lin(ks[2], ks[3], hidden_size, 1)
    w1a, b1a = lin(ks[4], ks[5], num_inputs, hidden_size)
    w2a, b2a = lin(ks[6], ks[7], hidden_size, num_outputs)
    return (w1c, b1c, w2c, b2c, w1a, b1a, w2a, b2a)


def fuse_params(params, *, matmul_dtype=jnp.float32, min_hidden=128):
    """Concatenate critic/actor weights once, outside the kernel.

    W1 = [w1c | w1a | 0]                    -> [D, HF], HF = lane-padded 2H (>=128)
    W2 = block_diag(w2c, w2a) lane-padded   -> [HF, P], P = multiple of 128
    b2 padded logit lanes are baked to -1e30 so the kernel softmax only masks col 0.
    Biases stay f32; weights cast to matmul_dtype. bf16 weights are fine on ALL
    generations (v5e's MXU is bf16-native); elementwise math stays f32 in-kernel.
    """
    w1c, b1c, w2c, b2c, w1a, b1a, w2a, b2a = params
    d, h = w1c.shape
    o = w2a.shape[1]
    hf = max(min_hidden, _round_up(2 * h, 128))
    p = max(128, _round_up(o + 1, 128))

    w1 = jnp.zeros((d, hf), jnp.float32)
    w1 = w1.at[:, :h].set(w1c).at[:, h:2 * h].set(w1a)
    w1 = w1.astype(matmul_dtype)                                    # [D, HF]

    b1 = jnp.zeros((1, hf), jnp.float32)
    b1 = b1.at[:, :h].set(b1c).at[:, h:2 * h].set(b1a)              # [1, HF]

    w2 = jnp.zeros((hf, p), jnp.float32)
    w2 = w2.at[:h, 0:1].set(w2c).at[h:2 * h, 1:1 + o].set(w2a)
    w2 = w2.astype(matmul_dtype)                                    # [HF, P]

    b2 = jnp.full((1, p), -1e30, jnp.float32)                       # padded lanes -> -1e30
    b2 = b2.at[:, 0:1].set(b2c).at[:, 1:1 + o].set(b2a)             # [1, P]
    return w1, b1, w2, b2


def _reference_forward(x, params):
    """Pure-JAX reference (f32) for correctness checks."""
    (w1c, b1c, w2c, b2c, w1a, b1a, w2a, b2a) = params
    value = jnp.maximum(x @ w1c + b1c, 0.0) @ w2c + b2c
    logits = jnp.maximum(x @ w1a + b1a, 0.0) @ w2a + b2a
    probs = jax.nn.softmax(logits, axis=1)
    return probs, value


if __name__ == "__main__":
    batch, num_inputs, num_outputs, hidden_size = 8, 16, 6, 32

    key = jax.random.PRNGKey(0)
    k_x, k_p, k_x2 = jax.random.split(key, 3)
    x = jax.random.normal(k_x, (batch, num_inputs), dtype=jnp.float32)
    params = init_params(k_p, num_inputs, num_outputs, hidden_size)
    probs_ref, value_ref = _reference_forward(x, params)

    # ---- exact path: f32 matmuls, tight tolerance ----
    fused_f32 = fuse_params(params, matmul_dtype=jnp.float32)
    probs, value = actor_critic_forward(x, fused_f32, num_outputs)
    probs = jax.block_until_ready(probs)
    value = jax.block_until_ready(value)

    assert probs.shape == (batch, num_outputs)
    assert value.shape == (batch, 1)
    assert jnp.allclose(probs, probs_ref, atol=1e-5, rtol=1e-5)
    assert jnp.allclose(value, value_ref, atol=1e-5, rtol=1e-5)
    assert jnp.allclose(jnp.sum(probs, axis=1), 1.0, atol=1e-5)

    # ---- fast path: bf16 matmul operands (valid on v5e/v6e/v7x), f32 elementwise ----
    fused_bf16 = fuse_params(params, matmul_dtype=jnp.bfloat16)
    probs16, value16 = actor_critic_forward(x, fused_bf16, num_outputs)
    probs16 = jax.block_until_ready(probs16)
    value16 = jax.block_until_ready(value16)

    assert jnp.allclose(probs16, probs_ref, atol=5e-2)
    assert jnp.allclose(value16, value_ref, atol=5e-2)
    assert jnp.allclose(jnp.sum(probs16, axis=1), 1.0, atol=1e-5)

    # ---- multi-step grid path (batch > tile): exercises even-step tiling + padding ----
    big_batch = 300
    x_big = jax.random.normal(k_x2, (big_batch, num_inputs), dtype=jnp.float32)
    probs_big_ref, value_big_ref = _reference_forward(x_big, params)
    probs_big, value_big = actor_critic_forward(x_big, fused_f32, num_outputs,
                                                block_b=128)
    probs_big = jax.block_until_ready(probs_big)
    value_big = jax.block_until_ready(value_big)

    assert probs_big.shape == (big_batch, num_outputs)
    assert value_big.shape == (big_batch, 1)
    assert jnp.allclose(probs_big, probs_big_ref, atol=1e-5, rtol=1e-5)
    assert jnp.allclose(value_big, value_big_ref, atol=1e-5, rtol=1e-5)

    print("KERNEL_OK")
</pallas_src>

<mosaic_0001>
module attributes {stable_mosaic.version = 11 : i64} {
  func.func @_actor_critic_kernel(%arg0: i32, %arg1: memref<8x16xf32, #tpu.memory_space<vmem>>, %arg2: memref<16x128xf32, #tpu.memory_space<vmem>>, %arg3: memref<1x128xf32, #tpu.memory_space<vmem>>, %arg4: memref<128x128xf32, #tpu.memory_space<vmem>>, %arg5: memref<1x128xf32, #tpu.memory_space<vmem>>, %arg6: memref<8x128xf32, #tpu.memory_space<vmem>>) attributes {dimension_semantics = [#tpu.dimension_semantics<parallel>], iteration_bounds = array<i64: 1>, scalar_prefetch = 0 : i64, scratch_operands = 0 : i64, tpu.core_type = #tpu.core_type<tc>, window_params = [{transform_indices = @transform_0, window_bounds = array<i64: 8, 16>}, {pipeline_mode = #tpu.pipeline_mode<synchronous>, transform_indices = @transform_1, window_bounds = array<i64: 16, 128>}, {pipeline_mode = #tpu.pipeline_mode<synchronous>, transform_indices = @transform_2, window_bounds = array<i64: 1, 128>}, {pipeline_mode = #tpu.pipeline_mode<synchronous>, transform_indices = @transform_3, window_bounds = array<i64: 128, 128>}, {pipeline_mode = #tpu.pipeline_mode<synchronous>, transform_indices = @transform_4, window_bounds = array<i64: 1, 128>}, {transform_indices = @transform_5, window_bounds = array<i64: 8, 128>}]} {
    %c0 = arith.constant 0 : index
    %c0_0 = arith.constant 0 : index
    %0 = vector.load %arg2[%c0, %c0_0] : memref<16x128xf32, #tpu.memory_space<vmem>>, vector<16x128xf32>
    %c0_1 = arith.constant 0 : index
    %c0_2 = arith.constant 0 : index
    %1 = vector.load %arg4[%c0_1, %c0_2] : memref<128x128xf32, #tpu.memory_space<vmem>>, vector<128x128xf32>
    %c0_3 = arith.constant 0 : index
    %c0_4 = arith.constant 0 : index
    %2 = vector.load %arg1[%c0_3, %c0_4] : memref<8x16xf32, #tpu.memory_space<vmem>>, vector<8x16xf32>
    %cst = arith.constant dense<0.000000e+00> : vector<8x128xf32>
    %3 = tpu.matmul %2, %0, %cst {dimension_numbers = #tpu.dot_dimension_numbers<[1], [0], [0], [1], [0, 0, 1, 1], [], []>} : vector<8x16xf32>, vector<16x128xf32>, vector<8x128xf32> -> vector<8x128xf32>
    %c0_5 = arith.constant 0 : index
    %c0_6 = arith.constant 0 : index
    %4 = vector.load %arg3[%c0_5, %c0_6] : memref<1x128xf32, #tpu.memory_space<vmem>>, vector<1x128xf32>
    %5 = vector.broadcast %4 : vector<1x128xf32> to vector<8x128xf32>
    %6 = arith.addf %3, %5 : vector<8x128xf32>
    %cst_7 = arith.constant 0.000000e+00 : f32
    %7 = vector.broadcast %cst_7 : f32 to vector<8x128xf32>
    %8 = arith.maximumf %6, %7 : vector<8x128xf32>
    %cst_8 = arith.constant dense<0.000000e+00> : vector<8x128xf32>
    %9 = tpu.matmul %8, %1, %cst_8 {dimension_numbers = #tpu.dot_dimension_numbers<[1], [0], [0], [1], [0, 0, 1, 1], [], []>} : vector<8x128xf32>, vector<128x128xf32>, vector<8x128xf32> -> vector<8x128xf32>
    %c0_9 = arith.constant 0 : index
    %c0_10 = arith.constant 0 : index
    %10 = vector.load %arg5[%c0_9, %c0_10] : memref<1x128xf32, #tpu.memory_space<vmem>>, vector<1x128xf32>
    %11 = vector.broadcast %10 : vector<1x128xf32> to vector<8x128xf32>
    %12 = arith.addf %9, %11 : vector<8x128xf32>
    %13 = tpu.iota {dimensions = array<i32: 1>} : vector<8x128xi32>
    %c0_i32 = arith.constant 0 : i32
    %14 = vector.broadcast %c0_i32 : i32 to vector<8x128xi32>
    %15 = arith.cmpi eq, %13, %14 : vector<8x128xi32>
    %cst_11 = arith.constant 0xFF800000 : f32
    %16 = vector.broadcast %cst_11 : f32 to vector<8x128xf32>
    %17 = arith.select %15, %16, %12 : vector<8x128xi1>, vector<8x128xf32>
    %cst_12 = arith.constant dense<0xFF800000> : vector<8xf32>
    %18 = vector.multi_reduction <maximumf>, %17, %cst_12 [1] : vector<8x128xf32> to vector<8xf32>
    %19 = vector.shape_cast %18 : vector<8xf32> to vector<8x1xf32>
    %20 = vector.broadcast %19 : vector<8x1xf32> to vector<8x128xf32>
    %21 = arith.subf %17, %20 : vector<8x128xf32>
    %22 = math.exp %21 : vector<8x128xf32>
    %cst_13 = arith.constant dense<0.000000e+00> : vector<8xf32>
    %23 = vector.multi_reduction <add>, %22, %cst_13 [1] : vector<8x128xf32> to vector<8xf32>
    %24 = vector.shape_cast %23 : vector<8xf32> to vector<8x1xf32>
    %25 = tpu.reciprocal %24 : vector<8x1xf32> -> vector<8x1xf32>
    %26 = vector.broadcast %25 : vector<8x1xf32> to vector<8x128xf32>
    %27 = arith.mulf %22, %26 : vector<8x128xf32>
    %28 = arith.select %15, %12, %27 : vector<8x128xi1>, vector<8x128xf32>
    %c0_14 = arith.constant 0 : index
    %c0_15 = arith.constant 0 : index
    %29 = vector.load %arg6[%c0_14, %c0_15] : memref<8x128xf32, #tpu.memory_space<vmem>>, vector<8x128xf32>
    tpu.vector_store %arg6[%c0_14, %c0_15], %28 {strides = array<i32>} : memref<8x128xf32, #tpu.memory_space<vmem>>, vector<8x128xf32>,
    return
  }
  func.func @transform_0(%arg0: i32) -> (i32, i32) {
    %c0_i32 = arith.constant 0 : i32
    %c0_i32_0 = arith.constant 0 : i32
    return %arg0, %c0_i32 : i32, i32
  }
  func.func @transform_1(%arg0: i32) -> (i32, i32) {
    %c0_i32 = arith.constant 0 : i32
    %c0_i32_0 = arith.constant 0 : i32
    %c0_i32_1 = arith.constant 0 : i32
    return %c0_i32, %c0_i32_0 : i32, i32
  }
  func.func @transform_2(%arg0: i32) -> (i32, i32) {
    %c0_i32 = arith.constant 0 : i32
    %c0_i32_0 = arith.constant 0 : i32
    %c0_i32_1 = arith.constant 0 : i32
    return %c0_i32, %c0_i32_0 : i32, i32
  }
  func.func @transform_3(%arg0: i32) -> (i32, i32) {
    %c0_i32 = arith.constant 0 : i32
    %c0_i32_0 = arith.constant 0 : i32
    %c0_i32_1 = arith.constant 0 : i32
    return %c0_i32, %c0_i32_0 : i32, i32
  }
  func.func @transform_4(%arg0: i32) -> (i32, i32) {
    %c0_i32 = arith.constant 0 : i32
    %c0_i32_0 = arith.constant 0 : i32
    %c0_i32_1 = arith.constant 0 : i32
    return %c0_i32, %c0_i32_0 : i32, i32
  }
  func.func @transform_5(%arg0: i32) -> (i32, i32) {
    %c0_i32 = arith.constant 0 : i32
    %c0_i32_0 = arith.constant 0 : i32
    return %arg0, %c0_i32 : i32, i32
  }
}

</mosaic_0001>

<bundles_post_ra>
// kernel: tpu_custom_call.1
= control target key start
LH: loop header
LB: loop body
LE: loop exit
PB: predicated region body
PF: predicated region fallthrough
CT: control target
= control target key end

     0   :  { %10 = vsyncpa [#allocation3], 0  ;;  %s355_s0 = inlined_call_operand.hbm [shape: f32[8,16], index: 0, kind: input, shape index: {}]   ;;  %s356_s1 = inlined_call_operand.hbm [shape: f32[16,128], index: 1, kind: input, shape index: {}]   ;;  %s357_s2 = inlined_call_operand.vmem [shape: f32[1,128], index: 2, kind: input, shape index: {}]   ;;  %s358_s3 = inlined_call_operand.hbm [shape: f32[128,128], index: 3, kind: input, shape index: {}]   ;;  %s359_s4 = inlined_call_operand.vmem [shape: f32[1,128], index: 4, kind: input, shape index: {}]   ;;  %s360_s5 = inlined_call_operand.hbm [shape: f32[8,128], index: 5, kind: output, shape index: {}]  }
   0x1   :  { %11 = vsyncpa [#allocation6], 0  ;;  %s28_s20 = sshll.u32 %s356_s1, 4  ;;  %s29_s20 = int_to_ptr.hbm [resolvable:$true] %s28_s20 }
   0x2   :  { %12 = vsyncpa [#allocation4], 0  ;;  %s299_s21 = smov [#allocation5]   ;;  %s18_s25 = sshll.u32 %s355_s0, 4  ;;  %s19_s25 = int_to_ptr.hbm [resolvable:$true] %s18_s25 }
   0x3   :  { %s30_s22 = sshll.u32 %s299_s21, 4  ;;  %s300_s26 = smov 128   ;;  %s31_s22 = int_to_ptr.vmem [resolvable:$true] %s30_s22 }
   0x4   :  { %s301_s27 = smov 8   ;;  %s302_s28 = smov [#allocation2]  }
   0x5   :  { %36 = dma.hbm_to_vmem [thread:$0]  %s29_s20, 256, %s31_s22, [#allocation6], %s300_s26, %s300_s26, %s301_s27  }
   0x6   :  { %s20_s29 = sshll.u32 %s302_s28, 4  ;;  %s43_s7 = sshll.u32 %s358_s3, 4  ;;  %s21_s29 = int_to_ptr.vmem [resolvable:$true] %s20_s29  ;;  %s44_s7 = int_to_ptr.hbm [resolvable:$true] %s43_s7 }
   0x7   :  { %23 = dma.hbm_to_vmem [thread:$0]  %s19_s25, 128, %s21_s29, [#allocation3]  }
   0x8   :  { %s303_s1 = smov [#allocation7]  }
   0x9   :  { %s45_s8 = sshll.u32 %s303_s1, 4  ;;  %s46_s8 = int_to_ptr.vmem [resolvable:$true] %s45_s8 }
   0xa   :  { %51 = dma.hbm_to_vmem [thread:$0]  %s44_s7, 2048, %s46_s8, [#allocation6], %s300_s26, %s300_s26, %s301_s27  }
   0xb   :  { %293 = dma.done.wait [#allocation3], 128  }
   0xc   :  { %294 = vsyncadd [#allocation3], 4294967168 }
   0xd   :  { %295 = dma.done.wait [#allocation6], 2304  }
   0xe   :  { %296 = vsyncadd [#allocation6], 4294964992  ;;  %v67_v0 = vld [vmem:[#allocation5 + $0x8] sm:$0xff]  ;;  %v66_v1 = vld [vmem:[#allocation5] sm:$0xff]  ;;  %vm89_vm0 = vcmask 130048   ;;  %v138_v23 = vlaneseq  ;;  %s173_s13 = sshll.u32 %s360_s5, 4  ;;  %s174_s13 = int_to_ptr.hbm [resolvable:$true] %s173_s13 }
   0xf   :  { %107 = vmatpush.msra.mxu0 %v67_v0  ;;  %v84_v2 = vld [vmem:[#allocation2] sm:$0xff]  ;;  %v83_v3 = vld [vmem:[#allocation7 + $0x78] sm:$0xff]  ;;  %v82_v4 = vld [vmem:[#allocation7 + $0x70] sm:$0xff] }
  0x10   :  { %118 = vmatpush.msra.mxu1 %v83_v3  ;;  %v81_v5 = vld [vmem:[#allocation7 + $0x68] sm:$0xff]  ;;  %v80_v6 = vld [vmem:[#allocation7 + $0x60] sm:$0xff]  ;;  %v79_v7 = vld [vmem:[#allocation7 + $0x58] sm:$0xff]  ;;  %v139_v24 = vand.u32 127, %v138_v23 }
  0x11   :  { %108 = vmatpush.msra.mxu0 %v66_v1  ;;  %v78_v8 = vld [vmem:[#allocation7 + $0x50] sm:$0xff]  ;;  %v77_v9 = vld [vmem:[#allocation7 + $0x48] sm:$0xff]  ;;  %v76_v10 = vld [vmem:[#allocation7 + $0x40] sm:$0xff] }
  0x12   :  { %184 = vmatmul.msk.f32.vlgmr.msra.gmra.mxu0 %vm89_vm0, %v84_v2  ;;  %119 = vmatpush.msra.mxu1 %v82_v4  ;;  %v75_v11 = vld [vmem:[#allocation7 + $0x38] sm:$0xff]  ;;  %v74_v12 = vld [vmem:[#allocation7 + $0x30] sm:$0xff]  ;;  %v73_v13 = vld [vmem:[#allocation7 + $0x28] sm:$0xff]  ;;  %vm140_vm1 = vcmp.eq.s32.totalorder %v139_v24, 0 }
  0x13   :  { %v72_v14 = vld [vmem:[#allocation7 + $0x20] sm:$0xff]  ;;  %v71_v15 = vld [vmem:[#allocation7 + $0x18] sm:$0xff]  ;;  %v70_v16 = vld [vmem:[#allocation7 + $0x10] sm:$0xff] }
  0x14   :  { %120 = vmatpush.msra.mxu1 %v81_v5  ;;  %v69_v17 = vld [vmem:[#allocation7 + $0x8] sm:$0xff]  ;;  %v68_v18 = vld [vmem:[#allocation7] sm:$0xff] }
  0x15   :  { %v191_v19 = vld [vmem:[%s357_s2] ss:$0 sm:$0xff]  ;;  %s304_s2 = smov [#allocation8]  }
  0x16   :  { %121 = vmatpush.msra.mxu1 %v80_v6  ;;  %v192_v25 = vld [vmem:[%s359_s4] ss:$0 sm:$0xff]  ;;  %s171_s4 = sshll.u32 %s304_s2, 4  ;;  %s172_s4 = int_to_ptr.vmem [resolvable:$true] %s171_s4 }
  0x18   :  { %122 = vmatpush.msra.mxu1 %v79_v7 }
  0x1a   :  { %123 = vmatpush.msra.mxu1 %v78_v8 }
  0x1c   :  { %124 = vmatpush.msra.mxu1 %v77_v9 }
  0x1e   :  { %125 = vmatpush.msra.mxu1 %v76_v10 }
  0x20   :  { %126 = vmatpush.msra.mxu1 %v75_v11 }
  0x22   :  { %127 = vmatpush.msra.mxu1 %v74_v12 }
  0x24   :  { %128 = vmatpush.msra.mxu1 %v73_v13 }
  0x26   :  { %129 = vmatpush.msra.mxu1 %v72_v14 }
  0x28   :  { %130 = vmatpush.msra.mxu1 %v71_v15 }
  0x2a   :  { %131 = vmatpush.msra.mxu1 %v70_v16 }
  0x2c   :  { %132 = vmatpush.msra.mxu1 %v69_v17 }
  0x2e   :  { %133 = vmatpush.msra.mxu1 %v68_v18 }
  0x8f   :  { %v110_v20 = vpop.f32.mrf.mxu0 }
  0x90   :  { %v111_v21 = vadd.f32 %v191_v19, %v110_v20 }
  0x92   :  { %v113_v22 = vmax.f32 %v111_v21, 0.0 }
  0x94   :  { %134 = vmatmul.f32.vlgmr.msra.gmra.mxu1 %v113_v22 }
 0x111   :  { %v135_v26 = vpop.f32.mrf.mxu1 }
 0x112   :  { %v136_v27 = vadd.f32 %v192_v25, %v135_v26 }
 0x114   :  { %v141_v28 = vsel %vm140_vm1, -inf, %v136_v27 }
 0x115   :  { %142 = vmax.xlane.f32.xlu0 %v141_v28 }
 0x188   :  { %v143_v29 = vpop.xlane.xlu0 %142 }
 0x189   :  { %v144_v30 = vsub.f32 %v141_v28, %v143_v29 }
 0x18b   :  { %v145_v31 = vmul.f32 1.442695, %v144_v30 }
 0x18d   :  { %193 = vpow2.f32 %v145_v31 }
 0x193   :  { %v194_v32 = vpop.eup %193 }
 0x194   :  { %147 = vadd.xlane.f32.xlu0 %v194_v32 }
 0x207   :  { %v148_v33 = vpop.xlane.xlu0 %147 }
 0x208   :  { %195 = vrcp.f32 %v148_v33  ;;  %v160_v37 = vand.u32 2147483648, %v148_v33  ;;  %v158_v39 = vand.u32 2147483647, %v148_v33  ;;  %vm154_vm3 = vweird.f32 %v148_v33 }
 0x20a   :  { %v161_v41 = vor.u32 1.1754944e-38, %v160_v37  ;;  %vm159_vm5 = vcmp.eq.f32.partialorder %v158_v39, 8.507059e+37 }
 0x20e   :  { %v196_v34 = vpop.eup %195 }
 0x20f   :  { %v150_v35 = vmul.f32 %v196_v34, %v148_v33  ;;  %vm155_vm2 = vweird.f32 %v196_v34 }
 0x210   :  { %vm156_vm4 = vmor %vm154_vm3, %vm155_vm2 }
 0x211   :  { %v151_v36 = vsub.f32 1.0, %v150_v35 }
 0x213   :  { %v152_v38 = vmul.f32 %v196_v34, %v151_v36 }
 0x215   :  { %v153_v40 = vadd.f32 %v196_v34, %v152_v38 }
 0x217   :  { %v157_v42 = vsel %vm156_vm4, %v196_v34, %v153_v40 }
 0x218   :  { %v162_v43 = vsel %vm159_vm5, %v161_v41, %v157_v42 }
 0x219   :  { %v163_v44 = vmul.f32 %v194_v32, %v162_v43 }
 0x21b   :  { %v164_v45 = vsel %vm140_vm1, %v136_v27, %v163_v44 }
 0x21c   :  { %165 = vst [vmem:[#allocation8] sm:$0xff] %v164_v45 }
 0x21d   :  { %176 = dma.vmem_to_hbm [thread:$0]  %s172_s4, 128, %s174_s13, [#allocation4]  }
 0x21e   :  { %297 = dma.done.wait [#allocation4], 128  }
 0x21f   :  { %298 = vsyncadd [#allocation4], 4294967168 }
 0x220   :  { %181 = vsyncpa [#allocation3], 1 }
 0x221   :  { %182 = vsyncpa [#allocation6], 1 }
 0x222   :  { %183 = vsyncpa [#allocation4], 1 }

</bundles_post_ra>
